<compile_context>
chip_gen: v7x
topology: tpu7x:2x2x1
jax: 0.10.0
libtpu: 0.0.40
codegen_flags: <defaults>
</compile_context>

<pallas_src>
import jax
import jax.numpy as jnp
from jax.experimental import pallas as pl
from jax.experimental.pallas import tpu as pltpu

_LANES = 128


def _linreg_kernel(w_ref, b_ref, x_ref, o_ref):
    # w_ref, b_ref: (1,) scalars in SMEM; x_ref / o_ref: 2-D VMEM tiles.
    o_ref[...] = x_ref[...] * w_ref[0] + b_ref[0]


def _round_up(v, m):
    return ((v + m - 1) // m) * m


def linear_regression_forward(x, w, b, *, max_block_rows=4096):
    """x: (N, 1), w: (1, 1) (PyTorch (out, in) layout), b: (1,)."""
    n, in_features = x.shape
    assert in_features == 1, "LinearRegressionModel uses nn.Linear(1, 1)"
    dtype = x.dtype

    # Scalar params -> SMEM (true scalar loads inside the kernel, no VMEM DMAs).
    w_s = w.reshape(1).astype(dtype)
    b_s = b.reshape(1).astype(dtype)
    smem_spec = pl.BlockSpec(memory_space=pltpu.MemorySpace.SMEM)

    # Sublane packing multiple depends on dtype width (8 f32, 16 bf16, 32 int8).
    sublanes = 8 * max(1, 4 // jnp.dtype(dtype).itemsize)

    if n % _LANES == 0 and n >= _LANES * sublanes:
        # ---- Lane-dense streaming path (N a multiple of 128) ------------------
        # (N, 1) -> (rows, 128) is a pure metadata reshape (no HBM round-trip);
        # every vreg uses all 128 lanes and stores lower to unmasked vst.
        # A non-divisible last row-block is masked automatically by Pallas, so
        # no padding is ever materialized.
        rows = n // _LANES
        block_rows = _round_up(min(max_block_rows, rows), sublanes)
        grid = pl.cdiv(rows, block_rows)

        out = pl.pallas_call(
            _linreg_kernel,
            out_shape=jax.ShapeDtypeStruct((rows, _LANES), dtype),
            grid_spec=pl.GridSpec(
                grid=(grid,),
                in_specs=[
                    smem_spec,  # w
                    smem_spec,  # b
                    pl.BlockSpec((block_rows, _LANES), lambda i: (i, 0)),
                ],
                out_specs=pl.BlockSpec((block_rows, _LANES), lambda i: (i, 0)),
            ),
            compiler_params=pltpu.CompilerParams(
                # No-op on single-TC chips (v5e/v6e); lets the grid shard across
                # both TensorCores on v7x when there are enough steps.
                dimension_semantics=("parallel",),
            ),
        )(w_s, b_s, x.reshape(rows, _LANES))
        return out.reshape(n, 1)

    # ---- Small / ragged-N fallback: natural (N, 1) layout, zero wrapper copies --
    # For the module's N=100 this is one full-array block and a single custom
    # call.  For large ragged N it grids over rows (lane utilisation is low but
    # there is no pad/slice HBM traffic and VMEM stays bounded).
    block_n = n if n <= max_block_rows else _round_up(max_block_rows, sublanes)
    grid = pl.cdiv(n, block_n)

    out = pl.pallas_call(
        _linreg_kernel,
        out_shape=jax.ShapeDtypeStruct((n, 1), dtype),
        grid_spec=pl.GridSpec(
            grid=(grid,),
            in_specs=[
                smem_spec,  # w
                smem_spec,  # b
                pl.BlockSpec((block_n, 1), lambda i: (i, 0)),
            ],
            out_specs=pl.BlockSpec((block_n, 1), lambda i: (i, 0)),
        ),
        compiler_params=pltpu.CompilerParams(
            dimension_semantics=("parallel",),
        ),
    )(w_s, b_s, x)
    return out


if __name__ == "__main__":
    key = jax.random.PRNGKey(0)
    kx, kw, kb = jax.random.split(key, 3)

    # Mimic the reference script: x = 2 * rand(100, 1)
    x = 2.0 * jax.random.uniform(kx, (100, 1), dtype=jnp.float32)

    # Deterministic init of nn.Linear(1, 1) params (uniform in [-1, 1] since fan_in=1)
    w = jax.random.uniform(kw, (1, 1), dtype=jnp.float32, minval=-1.0, maxval=1.0)
    b = jax.random.uniform(kb, (1,), dtype=jnp.float32, minval=-1.0, maxval=1.0)

    out = linear_regression_forward(x, w, b)
    jax.block_until_ready(out)

    ref = x @ w.T + b
    assert out.shape == (100, 1)
    assert jnp.allclose(out, ref, atol=1e-6), "mismatch vs reference (small path)"

    # Also exercise the lane-dense gridded path (multiple blocks + ragged edge).
    x_big = 2.0 * jax.random.uniform(kx, (128 * 33, 1), dtype=jnp.float32)
    out_big = linear_regression_forward(x_big, w, b, max_block_rows=8)
    jax.block_until_ready(out_big)
    ref_big = x_big @ w.T + b
    assert jnp.allclose(out_big, ref_big, atol=1e-6), "mismatch vs reference (lane-dense path)"

    print("KERNEL_OK")
</pallas_src>

<mosaic_0001>
module attributes {stable_mosaic.version = 11 : i64} {
  func.func @_linreg_kernel(%arg0: i32, %arg1: memref<1xf32, #tpu.memory_space<smem>>, %arg2: memref<1xf32, #tpu.memory_space<smem>>, %arg3: memref<100x1xf32, #tpu.memory_space<vmem>>, %arg4: memref<100x1xf32, #tpu.memory_space<vmem>>) attributes {dimension_semantics = [#tpu.dimension_semantics<parallel>], iteration_bounds = array<i64: 1>, scalar_prefetch = 0 : i64, scratch_operands = 0 : i64, tpu.core_type = #tpu.core_type<tc>, window_params = [{transform_indices = @transform_0, window_bounds = array<i64: 1>}, {transform_indices = @transform_1, window_bounds = array<i64: 1>}, {transform_indices = @transform_2, window_bounds = array<i64: 100, 1>}, {transform_indices = @transform_3, window_bounds = array<i64: 100, 1>}]} {
    %c0 = arith.constant 0 : index
    %c0_0 = arith.constant 0 : index
    %0 = vector.load %arg3[%c0, %c0_0] : memref<100x1xf32, #tpu.memory_space<vmem>>, vector<100x1xf32>
    %c0_1 = arith.constant 0 : index
    %1 = memref.load %arg1[%c0_1] : memref<1xf32, #tpu.memory_space<smem>>
    %2 = vector.broadcast %1 : f32 to vector<100x1xf32>
    %3 = arith.mulf %0, %2 : vector<100x1xf32>
    %c0_2 = arith.constant 0 : index
    %4 = memref.load %arg2[%c0_2] : memref<1xf32, #tpu.memory_space<smem>>
    %5 = vector.broadcast %4 : f32 to vector<100x1xf32>
    %6 = arith.addf %3, %5 : vector<100x1xf32>
    %c0_3 = arith.constant 0 : index
    %c0_4 = arith.constant 0 : index
    %7 = vector.load %arg4[%c0_3, %c0_4] : memref<100x1xf32, #tpu.memory_space<vmem>>, vector<100x1xf32>
    tpu.vector_store %arg4[%c0_3, %c0_4], %6 {strides = array<i32>} : memref<100x1xf32, #tpu.memory_space<vmem>>, vector<100x1xf32>,
    return
  }
  func.func @transform_0(%arg0: i32) -> i32 {
    %c0_i32 = arith.constant 0 : i32
    %c0_i32_0 = arith.constant 0 : i32
    return %c0_i32 : i32
  }
  func.func @transform_1(%arg0: i32) -> i32 {
    %c0_i32 = arith.constant 0 : i32
    %c0_i32_0 = arith.constant 0 : i32
    return %c0_i32 : i32
  }
  func.func @transform_2(%arg0: i32) -> (i32, i32) {
    %c0_i32 = arith.constant 0 : i32
    %c0_i32_0 = arith.constant 0 : i32
    return %arg0, %c0_i32 : i32, i32
  }
  func.func @transform_3(%arg0: i32) -> (i32, i32) {
    %c0_i32 = arith.constant 0 : i32
    %c0_i32_0 = arith.constant 0 : i32
    return %arg0, %c0_i32 : i32, i32
  }
}

</mosaic_0001>

<bundles_post_ra>
// kernel: tpu_custom_call.1
= control target key start
LH: loop header
LB: loop body
LE: loop exit
PB: predicated region body
PF: predicated region fallthrough
CT: control target
= control target key end

     0   :  { %vm59_vm0 = vcmask 7168   ;;  %vm72_vm1 = vcmask 3072   ;;  %s194_s0 = inlined_call_operand.<no memory space> [shape: f32[1], index: 0, kind: input, shape index: {}]   ;;  %s195_s1 = inlined_call_operand.<no memory space> [shape: f32[1], index: 1, kind: input, shape index: {}]   ;;  %s196_s2 = inlined_call_operand.vmem [shape: f32[100,1], index: 2, kind: input, shape index: {}]   ;;  %s197_s3 = inlined_call_operand.vmem [shape: f32[100,1], index: 3, kind: output, shape index: {}]  }
   0x1   :  { %v16_v0 = vld [vmem:[%s196_s2] sm:$0xff]  ;;  %v30_v1 = vstv %s194_s0  ;;  %v45_v2 = vstv %s195_s1  ;;  %v17_v3 = vld [vmem:[%s196_s2 + $0x8] sm:$0xff] }
   0x2   :  { %v31_v4 = vmul.f32 %v30_v1, %v16_v0  ;;  %v32_v5 = vmul.f32 %v30_v1, %v17_v3  ;;  %v18_v6 = vld [vmem:[%s196_s2 + $0x10] sm:$0xff]  ;;  %v19_v7 = vld [vmem:[%s196_s2 + $0x18] sm:$0xff]  ;;  %v20_v8 = vld [vmem:[%s196_s2 + $0x20] sm:$0xff] }
   0x3   :  { %v33_v9 = vmul.f32 %v30_v1, %v18_v6  ;;  %v34_v10 = vmul.f32 %v30_v1, %v19_v7  ;;  %v35_v11 = vmul.f32 %v30_v1, %v20_v8  ;;  %v21_v12 = vld [vmem:[%s196_s2 + $0x28] sm:$0xff]  ;;  %v22_v13 = vld [vmem:[%s196_s2 + $0x30] sm:$0xff]  ;;  %v23_v14 = vld [vmem:[%s196_s2 + $0x38] sm:$0xff] }
   0x4   :  { %v46_v15 = vadd.f32 %v45_v2, %v31_v4  ;;  %v47_v16 = vadd.f32 %v45_v2, %v32_v5  ;;  %v36_v17 = vmul.f32 %v30_v1, %v21_v12  ;;  %v37_v18 = vmul.f32 %v30_v1, %v22_v13  ;;  %v24_v19 = vld [vmem:[%s196_s2 + $0x40] sm:$0xff]  ;;  %v25_v20 = vld [vmem:[%s196_s2 + $0x48] sm:$0xff]  ;;  %v26_v21 = vld [vmem:[%s196_s2 + $0x50] sm:$0xff] }
   0x5   :  { %v48_v22 = vadd.f32 %v45_v2, %v33_v9  ;;  %v49_v23 = vadd.f32 %v45_v2, %v34_v10  ;;  %v50_v24 = vadd.f32 %v45_v2, %v35_v11  ;;  %v38_v25 = vmul.f32 %v30_v1, %v23_v14  ;;  %v27_v26 = vld [vmem:[%s196_s2 + $0x58] sm:$0xff]  ;;  %v28_v27 = vld [vmem:[%s196_s2 + $0x60] sm:$0xf] }
   0x6   :  { %60 = vst.msk [vmem:[%s197_s3] sm:$0xff] %vm59_vm0, %v46_v15  ;;  %61 = vst.msk [vmem:[%s197_s3 + $0x8] sm:$0xff] %vm59_vm0, %v47_v16  ;;  %v51_v28 = vadd.f32 %v45_v2, %v36_v17  ;;  %v52_v29 = vadd.f32 %v45_v2, %v37_v18  ;;  %v39_v30 = vmul.f32 %v30_v1, %v24_v19 }
   0x7   :  { %v40_v31 = vmul.f32 %v30_v1, %v25_v20  ;;  %62 = vst.msk [vmem:[%s197_s3 + $0x10] sm:$0xff] %vm59_vm0, %v48_v22  ;;  %63 = vst.msk [vmem:[%s197_s3 + $0x18] sm:$0xff] %vm59_vm0, %v49_v23  ;;  %v53_v32 = vadd.f32 %v45_v2, %v38_v25  ;;  %v41_v33 = vmul.f32 %v30_v1, %v26_v21 }
   0x8   :  { %64 = vst.msk [vmem:[%s197_s3 + $0x20] sm:$0xff] %vm59_vm0, %v50_v24  ;;  %v42_v34 = vmul.f32 %v30_v1, %v27_v26  ;;  %v43_v35 = vmul.f32 %v30_v1, %v28_v27  ;;  %65 = vst.msk [vmem:[%s197_s3 + $0x28] sm:$0xff] %vm59_vm0, %v51_v28  ;;  %v54_v36 = vadd.f32 %v45_v2, %v39_v30 }
   0x9   :  { %66 = vst.msk [vmem:[%s197_s3 + $0x30] sm:$0xff] %vm59_vm0, %v52_v29  ;;  %v55_v37 = vadd.f32 %v45_v2, %v40_v31  ;;  %67 = vst.msk [vmem:[%s197_s3 + $0x38] sm:$0xff] %vm59_vm0, %v53_v32  ;;  %v56_v38 = vadd.f32 %v45_v2, %v41_v33 }
   0xa   :  { %v57_v39 = vadd.f32 %v45_v2, %v42_v34  ;;  %v58_v40 = vadd.f32 %v45_v2, %v43_v35  ;;  %68 = vst.msk [vmem:[%s197_s3 + $0x40] sm:$0xff] %vm59_vm0, %v54_v36 }
   0xb   :  { %69 = vst.msk [vmem:[%s197_s3 + $0x48] sm:$0xff] %vm59_vm0, %v55_v37  ;;  %70 = vst.msk [vmem:[%s197_s3 + $0x50] sm:$0xff] %vm59_vm0, %v56_v38 }
   0xc   :  { %71 = vst.msk [vmem:[%s197_s3 + $0x58] sm:$0xff] %vm59_vm0, %v57_v39 }
   0xd   :  { %73 = vst.msk [vmem:[%s197_s3 + $0x60] sm:$0xf] %vm72_vm1, %v58_v40 }

</bundles_post_ra>
